<compile_context>
chip_gen: v6e
topology: v6e:2x2x1
jax: 0.10.0
libtpu: 0.0.40
codegen_flags: <defaults>
</compile_context>

<pallas_src>
import functools

import jax
import jax.numpy as jnp
from jax import lax
from jax.experimental import pallas as pl
from jax.experimental.pallas import tpu as pltpu


def _proj_kernel(x_ref, w_ref, b_ref, o_ref):
    # x_ref: (tm, K)  io dtype   patch-row tile (pipelined)
    # w_ref: (E, K)   io dtype   conv weight, DMA'd once, resident
    # b_ref: (E, 1)   f32        bias, resident
    # o_ref: (E, tm)  out dtype  transposed (channels-major) tile -> NCDHW output
    acc = lax.dot_general(
        w_ref[...], x_ref[...],
        dimension_numbers=(((1,), (1,)), ((), ())),   # contract over K ("A @ B^T")
        preferred_element_type=jnp.float32)
    o_ref[...] = (acc + b_ref[...]).astype(o_ref.dtype)


def _ceil_div(a, b):
    return -(-a // b)


def _choose_tm(L, B, tm_max):
    """Token-tile size along L.

    - multiple of 128 (lane-dense output stores, satisfies the (8,128) rule)
      or the full L extent for tiny problems;
    - as large as possible (amortize ~0.35us per grid step) while keeping
      roughly >= 8 total grid steps so both v7x TensorCores get balanced work.
    """
    if L <= 128:
        return L
    tm_cap = max(128, (tm_max // 128) * 128)
    want_l_blocks = _ceil_div(8, max(B, 1))
    tm = _ceil_div(L, want_l_blocks)
    tm = _ceil_div(tm, 128) * 128
    tm = min(tm, tm_cap)
    if tm >= L:
        return L
    return tm


@functools.partial(
    jax.jit, static_argnames=("patch_size", "io_dtype", "out_dtype", "tm_max"))
def patch_embed_3d(x, weight, bias, *, patch_size=(2, 4, 4),
                   io_dtype=jnp.bfloat16, out_dtype=None, tm_max=8192):
    """PatchEmbed3D forward.

    x:      (B, C, D, H, W)   NCDHW, as PyTorch Conv3d input.
    weight: (E, C, pd, ph, pw) PyTorch OIDHW conv weight; bias: (E,).
    Returns (B, E, D', H', W') NCDHW conv output (matches the PyTorch module).

    io_dtype:  dtype for the activation/weight HBM<->VMEM traffic and MXU feed
               (default bf16; accumulation and bias add are always f32).
    out_dtype: output dtype (default: x.dtype, i.e. independent of io_dtype).
    tm_max:    max token rows per grid step.
    """
    B, C, D, H, W = x.shape
    pd, ph, pw = patch_size
    E = weight.shape[0]
    out_dtype = x.dtype if out_dtype is None else out_dtype
    io_dtype = x.dtype if io_dtype is None else io_dtype

    # Trailing-edge zero pad, as in the module's F.pad calls (only when needed;
    # under jit it fuses with the patch-gather copy below).
    pad_d, pad_h, pad_w = (-D) % pd, (-H) % ph, (-W) % pw
    if pad_d or pad_h or pad_w:
        # TODO(synk): fold this pad into masked edge tiles inside the kernel.
        x = jnp.pad(x, ((0, 0), (0, 0), (0, pad_d), (0, pad_h), (0, pad_w)))
    D2, H2, W2 = D + pad_d, H + pad_h, W + pad_w
    Do, Ho, Wo = D2 // pd, H2 // ph, W2 // pw
    K = C * pd * ph * pw
    L = Do * Ho * Wo

    # Patch gather: single fused XLA copy pass (read x once, write bf16 patches
    # once).  Flatten order (C, pd, ph, pw) matches the OIDHW weight flatten so
    # the weight itself needs no permutation.
    # TODO(synk): move this gather into the kernel (see module docstring).
    xp = x.reshape(B, C, Do, pd, Ho, ph, Wo, pw)
    xp = xp.transpose(0, 2, 4, 6, 1, 3, 5, 7)        # (B, Do, Ho, Wo, C, pd, ph, pw)
    patches = xp.reshape(B, L, K).astype(io_dtype)

    w_ek = weight.reshape(E, K).astype(io_dtype)      # no transpose needed
    b_e1 = bias.reshape(E, 1).astype(jnp.float32)     # bias add stays f32

    tm = _choose_tm(L, B, tm_max)
    nl = pl.cdiv(L, tm)
    grid = (B, nl)

    io_bytes = jnp.dtype(io_dtype).itemsize
    out_bytes = jnp.dtype(out_dtype).itemsize
    cost = pl.CostEstimate(
        flops=2 * B * L * K * E,
        transcendentals=0,
        bytes_accessed=(B * L * K + E * K) * io_bytes + B * L * E * out_bytes + E * 4,
    )

    out = pl.pallas_call(
        _proj_kernel,
        out_shape=jax.ShapeDtypeStruct((B, E, L), out_dtype),
        grid_spec=pltpu.PrefetchScalarGridSpec(
            num_scalar_prefetch=0,
            grid=grid,
            in_specs=[
                # Patch-row tile; ragged last L block is fine: padded rows only
                # pass through matmul+bias and the out-of-range lanes are masked
                # on store (pinned by test case 4 below).
                # (If a trace ever shows exposed DMA between steps, add
                #  pipeline_mode=pl.Buffered(3) here.)
                pl.BlockSpec((None, tm, K), lambda b, i: (b, i, 0)),
                pl.BlockSpec((E, K), lambda b, i: (0, 0)),   # weight: resident
                pl.BlockSpec((E, 1), lambda b, i: (0, 0)),   # bias:   resident
            ],
            out_specs=pl.BlockSpec((None, E, tm), lambda b, i: (b, 0, i)),
        ),
        compiler_params=pltpu.CompilerParams(
            # All (b, i) tiles are independent -> both axes parallel; v7x shards
            # them across its two TensorCores (tm is chosen so there are >=2
            # steps whenever the problem allows it).
            dimension_semantics=("parallel", "parallel")),
        cost_estimate=cost,
    )(patches, w_ek, b_e1)

    # Free contiguous reshape to NCDHW (no extra HBM pass).
    return out.reshape(B, E, Do, Ho, Wo)


def _reference_conv3d(x, weight, bias, patch_size):
    # Pure-JAX reference: F.pad-style trailing pad + strided Conv3d
    # (NCDHW / OIDHW, stride == kernel), full-precision accumulate.
    pd, ph, pw = patch_size
    _, _, D, H, W = x.shape
    x = jnp.pad(x, ((0, 0), (0, 0),
                    (0, (-D) % pd), (0, (-H) % ph), (0, (-W) % pw)))
    y = lax.conv_general_dilated(
        x, weight,
        window_strides=patch_size,
        padding="VALID",
        dimension_numbers=("NCDHW", "OIDHW", "NCDHW"),
        precision=lax.Precision.HIGHEST,
    )
    return y + bias.reshape(1, -1, 1, 1, 1)


if __name__ == "__main__":
    patch_size = (2, 4, 4)
    in_chans = 3
    embed_dim = 96

    key = jax.random.PRNGKey(0)
    kx, kw, kb, kx2, kx3 = jax.random.split(key, 5)

    # Deterministic synthetic Conv3d parameters.
    fan_in = in_chans * patch_size[0] * patch_size[1] * patch_size[2]
    bound = 1.0 / (fan_in ** 0.5)
    weight = jax.random.uniform(
        kw, (embed_dim, in_chans) + patch_size, dtype=jnp.float32,
        minval=-bound, maxval=bound)
    bias = jax.random.uniform(
        kb, (embed_dim,), dtype=jnp.float32, minval=-bound, maxval=bound)

    # Case 1: divisible shapes, default bf16 I/O (f32 accumulate, f32 output).
    x = jax.random.normal(kx, (2, in_chans, 4, 8, 8), dtype=jnp.float32)
    ref = _reference_conv3d(x, weight, bias, patch_size)
    out = jax.block_until_ready(
        patch_embed_3d(x, weight, bias, patch_size=patch_size))
    assert out.shape == ref.shape, (out.shape, ref.shape)
    assert out.dtype == jnp.float32, out.dtype          # output dtype != io dtype
    assert jnp.allclose(out, ref, atol=5e-2, rtol=5e-2)

    # Case 2: same shapes, f32 I/O -> tight tolerance.
    out32 = jax.block_until_ready(
        patch_embed_3d(x, weight, bias, patch_size=patch_size,
                       io_dtype=jnp.float32))
    assert jnp.allclose(out32, ref, atol=1e-4, rtol=1e-4)

    # Case 3: non-divisible shapes (exercises the F.pad branch), f32 I/O.
    x2 = jax.random.normal(kx2, (2, in_chans, 5, 9, 10), dtype=jnp.float32)
    ref2 = _reference_conv3d(x2, weight, bias, patch_size)
    out2 = jax.block_until_ready(
        patch_embed_3d(x2, weight, bias, patch_size=patch_size,
                       io_dtype=jnp.float32))
    assert out2.shape == ref2.shape, (out2.shape, ref2.shape)
    assert jnp.allclose(out2, ref2, atol=1e-4, rtol=1e-4)

    # Case 4: L > tm with L % tm != 0 (pins the masked ragged-block behavior
    # the kernel relies on for the last token tile).
    x3 = jax.random.normal(kx3, (1, in_chans, 2, 16, 160), dtype=jnp.float32)
    ref3 = _reference_conv3d(x3, weight, bias, patch_size)
    out3 = jax.block_until_ready(
        patch_embed_3d(x3, weight, bias, patch_size=patch_size,
                       io_dtype=jnp.float32, tm_max=128))
    assert out3.shape == ref3.shape, (out3.shape, ref3.shape)
    assert jnp.allclose(out3, ref3, atol=1e-4, rtol=1e-4)

    print("KERNEL_OK")
</pallas_src>

<mosaic_0001>
module attributes {stable_mosaic.version = 11 : i64} {
  func.func @_proj_kernel(%arg0: i32, %arg1: i32, %arg2: memref<1x8x96xbf16, #tpu.memory_space<vmem>>, %arg3: memref<96x96xbf16, #tpu.memory_space<vmem>>, %arg4: memref<96x1xf32, #tpu.memory_space<vmem>>, %arg5: memref<1x96x8xf32, #tpu.memory_space<vmem>>) attributes {dimension_semantics = [#tpu.dimension_semantics<parallel>, #tpu.dimension_semantics<parallel>], iteration_bounds = array<i64: 2, 1>, scalar_prefetch = 0 : i64, scratch_operands = 0 : i64, tpu.core_type = #tpu.core_type<tc>, window_params = [{transform_indices = @transform_0, window_bounds = array<i64: 1, 8, 96>}, {pipeline_mode = #tpu.pipeline_mode<synchronous>, transform_indices = @transform_1, window_bounds = array<i64: 96, 96>}, {pipeline_mode = #tpu.pipeline_mode<synchronous>, transform_indices = @transform_2, window_bounds = array<i64: 96, 1>}, {transform_indices = @transform_3, window_bounds = array<i64: 1, 96, 8>}]} {
    %c0 = arith.constant 0 : index
    %c0_0 = arith.constant 0 : index
    %0 = vector.load %arg3[%c0, %c0_0] : memref<96x96xbf16, #tpu.memory_space<vmem>>, vector<96x96xbf16>
    %c0_1 = arith.constant 0 : index
    %c0_2 = arith.constant 0 : index
    %c0_3 = arith.constant 0 : index
    %1 = vector.load %arg2[%c0_1, %c0_2, %c0_3] : memref<1x8x96xbf16, #tpu.memory_space<vmem>>, vector<1x8x96xbf16>
    %2 = vector.shape_cast %1 : vector<1x8x96xbf16> to vector<8x96xbf16>
    %cst = arith.constant dense<0.000000e+00> : vector<96x8xf32>
    %3 = tpu.matmul %0, %2, %cst {dimension_numbers = #tpu.dot_dimension_numbers<[1], [1], [0], [0], [0, 0, 1, 0], [], []>} : vector<96x96xbf16>, vector<8x96xbf16>, vector<96x8xf32> -> vector<96x8xf32>
    %c0_4 = arith.constant 0 : index
    %c0_5 = arith.constant 0 : index
    %4 = vector.load %arg4[%c0_4, %c0_5] : memref<96x1xf32, #tpu.memory_space<vmem>>, vector<96x1xf32>
    %5 = vector.broadcast %4 : vector<96x1xf32> to vector<96x8xf32>
    %6 = arith.addf %3, %5 : vector<96x8xf32>
    %c0_6 = arith.constant 0 : index
    %c0_7 = arith.constant 0 : index
    %c0_8 = arith.constant 0 : index
    %7 = vector.load %arg5[%c0_6, %c0_7, %c0_8] : memref<1x96x8xf32, #tpu.memory_space<vmem>>, vector<1x96x8xf32>
    %8 = vector.shape_cast %7 : vector<1x96x8xf32> to vector<96x8xf32>
    %9 = vector.shape_cast %6 : vector<96x8xf32> to vector<1x96x8xf32>
    tpu.vector_store %arg5[%c0_6, %c0_7, %c0_8], %9 {strides = array<i32>} : memref<1x96x8xf32, #tpu.memory_space<vmem>>, vector<1x96x8xf32>,
    return
  }
  func.func @transform_0(%arg0: i32, %arg1: i32) -> (i32, i32, i32) {
    %c0_i32 = arith.constant 0 : i32
    %c0_i32_0 = arith.constant 0 : i32
    return %arg0, %arg1, %c0_i32 : i32, i32, i32
  }
  func.func @transform_1(%arg0: i32, %arg1: i32) -> (i32, i32) {
    %c0_i32 = arith.constant 0 : i32
    %c0_i32_0 = arith.constant 0 : i32
    %c0_i32_1 = arith.constant 0 : i32
    return %c0_i32, %c0_i32_0 : i32, i32
  }
  func.func @transform_2(%arg0: i32, %arg1: i32) -> (i32, i32) {
    %c0_i32 = arith.constant 0 : i32
    %c0_i32_0 = arith.constant 0 : i32
    %c0_i32_1 = arith.constant 0 : i32
    return %c0_i32, %c0_i32_0 : i32, i32
  }
  func.func @transform_3(%arg0: i32, %arg1: i32) -> (i32, i32, i32) {
    %c0_i32 = arith.constant 0 : i32
    %c0_i32_0 = arith.constant 0 : i32
    return %arg0, %c0_i32, %arg1 : i32, i32, i32
  }
}

</mosaic_0001>

<bundles_post_ra>
// kernel: patch_embed_3d.1
= control target key start
LH: loop header
LB: loop body
LE: loop exit
PB: predicated region body
PF: predicated region fallthrough
CT: control target
= control target key end

     0   :  { %s636_s12 = smov 0   ;;  %s638_s13 = smov 0   ;;  %s762_s0 = inlined_call_operand.vmem [shape: bf16[2,8,96], index: 0, kind: input, shape index: {}]   ;;  %s763_s1 = inlined_call_operand.vmem [shape: bf16[96,96], index: 1, kind: input, shape index: {}]   ;;  %s764_s2 = inlined_call_operand.vmem [shape: f32[96,1], index: 2, kind: input, shape index: {}]   ;;  %s765_s3 = inlined_call_operand.vmem [shape: f32[2,96,8], index: 3, kind: output, shape index: {}]  }
   0x1   :  { %s640_s14 = smov 0  }
   0x2 LB: > { %s25_s15 = sadd.s32 1, %s609_s13  ;;  %p515_p0 = scmp.ge.s32.totalorder %s613_s14, 1  ;;  %s613_s14 = sphi %s640_s14, %s13_s14   ;;  %s609_s13 = sphi %s638_s13, %s767_s13   ;;  %s605_s12 = sphi %s636_s12, %s766_s12  }
   0x3   : > { %p27_p1 = scmp.ge.s32.totalorder %s25_s15, 2  ;;  %p155_p2 = scmp.lt.s32.totalorder %s613_s14, 3 }
   0x5   : > { %s769_s15 = smov (%p27_p1, %s25_s15), 0  ;;  %p156_p3 = pnand %p515_p0, %p155_p2 }
   0x6   : > { %p184_p4 = scmp.lt.s32.totalorder (!%p156_p3), %s605_s12, 1 }
   0x7   : > { %159 = sbr.rel (%p156_p3) target bundleno = 234 (0xea), region = 32 }
   0xc   : > { %vm315_vm0 = vcmask 785408   ;;  %v585_v0 = vld [vmem:[%s763_s1] sm:$0xff]   ;;  %s771_s12 = smov (!%p184_p4, %s605_s12), 1  ;;  %v586_v1 = vld [vmem:[%s763_s1 + $0x10] sm:$0xff]   ;;  %v615_v2 = vmov 0   ;;  %v216_v7 = vld [vmem:[%s764_s2 + $0x18] sm:$0xff] }
   0xd   : > { %584 = vset.pattern.permute.xlu1 %v615_v2  ;;  %583 = vset.pattern.permute.xlu0 %v615_v2  ;;  %s516_s20 = sshll.u32 %s771_s12, 2  ;;  %v215_v4 = vld [vmem:[%s764_s2 + $0x10] sm:$0xff]  ;;  %v213_v6 = vld [vmem:[%s764_s2] sm:$0xff]  ;;  %v214_v8 = vld [vmem:[%s764_s2 + $0x8] sm:$0xff]  ;;  %s557_s6 = smul.u32 96, %s771_s12  ;;  %vm418_vm1 = vcmask 64512  }
   0xe   : > { %541 = vmatprep.mubr.msk.bf16.mxu0 %vm315_vm0, %v585_v0  ;;  %545 = vmatprep.mubr.msk.bf16.mxu1 %vm315_vm0, %v586_v1  ;;  %s190_s23 = scalar_lea.vmem %s762_s0, %s516_s20  ;;  %v587_v9 = vld [vmem:[%s763_s1 + $0x8] sm:$0xff]   ;;  %v588_v10 = vld [vmem:[%s763_s1 + $0x18] sm:$0xff]   ;;  %v589_v11 = vld [vmem:[%s763_s1 + $0x20] sm:$0xff]  }
   0xf   : > { %v212_v3 = vld [vmem:[%s190_s23] sm:$0xf]  ;;  %237 = vperm.xlu1 %584, %v215_v4   ;;  %227 = vperm.xlu0 %583, %v213_v6   ;;  %v218_v12 = vld [vmem:[%s764_s2 + $0x28] sm:$0xff]  ;;  %v220_v14 = vld [vmem:[%s764_s2 + $0x38] sm:$0xff]  ;;  %s727_s9 = scalar_lea.vmem %s765_s3, %s557_s6 }
  0x10   : > { %555 = vmatprep.subr.msk.bf16.mxu0 %vm315_vm0, %v212_v3  ;;  %556 = vmatprep.subr.msk.bf16.mxu1 %vm315_vm0, %v212_v3  ;;  %v335_v5 = vsel %vm315_vm0, %v212_v3, 0  ;;  %v217_v13 = vld [vmem:[%s764_s2 + $0x20] sm:$0xff]  ;;  %v219_v15 = vld [vmem:[%s764_s2 + $0x30] sm:$0xff]  ;;  %v590_v16 = vld [vmem:[%s763_s1 + $0x28] sm:$0xff]  }
  0x11   : > { %540 = vmatpush3.bf16.xpose.msra.mxu0 %v335_v5  ;;  %554 = vmatpush3.bf16.xpose.msra.mxu1 %v335_v5  ;;  %v222_v17 = vld [vmem:[%s764_s2 + $0x48] sm:$0xff]  ;;  %v221_v18 = vld [vmem:[%s764_s2 + $0x40] sm:$0xff]  ;;  %v224_v19 = vld [vmem:[%s764_s2 + $0x58] sm:$0xff] }
  0x12   : > { %v223_v20 = vld [vmem:[%s764_s2 + $0x50] sm:$0xff] }
  0x13   : > { %242 = vperm.xlu1 %584, %v216_v7   ;;  %232 = vperm.xlu0 %583, %v214_v8  }
  0x17   : > { %252 = vperm.xlu1 %584, %v218_v12   ;;  %247 = vperm.xlu0 %583, %v217_v13  }
  0x18   : > { %542 = vmatmul.mubr.msk.bf16.vlgmr.msra.gmra.mxu0 %vm315_vm0, %v587_v9  ;;  %546 = vmatmul.mubr.msk.bf16.vlgmr.msra.gmra.mxu1 %vm315_vm0, %v588_v10 }
  0x19   : > { %549 = vmatprep.mubr.msk.bf16.mxu1 %vm315_vm0, %v589_v11 }
  0x1b   : > { %262 = vperm.xlu1 %584, %v220_v14   ;;  %257 = vperm.xlu0 %583, %v219_v15  }
  0x1f   : > { %272 = vperm.xlu1 %584, %v222_v17   ;;  %267 = vperm.xlu0 %583, %v221_v18  }
  0x20   : > { %550 = vmatmul.mubr.msk.bf16.gmra.mxu1 %vm315_vm0, %v590_v16 }
  0x23   : > { %282 = vperm.xlu1 %584, %v224_v19   ;;  %277 = vperm.xlu0 %583, %v223_v20  }
  0x8a   : > { %v228_v21 = vpop.permute.xlu0 %227  ;;  %v238_v22 = vpop.permute.xlu1 %237 }
  0x8e   : > { %v233_v23 = vpop.permute.xlu0 %232  ;;  %v243_v24 = vpop.permute.xlu1 %242 }
  0x92   : > { %v248_v25 = vpop.permute.xlu0 %247  ;;  %v253_v26 = vpop.permute.xlu1 %252 }
  0x96   : > { %v258_v27 = vpop.permute.xlu0 %257  ;;  %v263_v28 = vpop.permute.xlu1 %262 }
  0x9a   : > { %v268_v31 = vpop.permute.xlu0 %267  ;;  %v273_v40 = vpop.permute.xlu1 %272 }
  0x9e   : > { %v278_v47 = vpop.permute.xlu0 %277  ;;  %v283_v52 = vpop.permute.xlu1 %282 }
  0xd8   : > { %v543_v29 = vpop.f32.mrf.mxu0  ;;  %v547_v30 = vpop.f32.mrf.mxu1 }
  0xd9   : > { %v380_v32 = vadd.f32 %v543_v29, %v238_v22  ;;  %v396_v33 = vadd.f32 %v547_v30, %v258_v27 }
  0xda   : > { %v371_v34 = vpop.f32.mrf.mxu0  ;;  %v387_v35 = vpop.f32.mrf.mxu1 }
  0xdb   : > { %421 = vst.msk [vmem:[%s727_s9 + $0x10] sm:$0xff] %vm418_vm1, %v380_v32  ;;  %425 = vst.msk [vmem:[%s727_s9 + $0x30] sm:$0xff] %vm418_vm1, %v396_v33  ;;  %v372_v36 = vadd.f32 %v371_v34, %v228_v21  ;;  %v388_v37 = vadd.f32 %v387_v35, %v248_v25 }
  0xdc   : > { %v544_v38 = vpop.f32.mrf.mxu0  ;;  %v548_v39 = vpop.f32.mrf.mxu1 }
  0xdd   : > { %419 = vst.msk [vmem:[%s727_s9] sm:$0xff] %vm418_vm1, %v372_v36  ;;  %423 = vst.msk [vmem:[%s727_s9 + $0x20] sm:$0xff] %vm418_vm1, %v388_v37  ;;  %v383_v41 = vadd.f32 %v544_v38, %v243_v24  ;;  %v399_v42 = vadd.f32 %v548_v39, %v263_v28 }
  0xde   : > { %v374_v43 = vpop.f32.mrf.mxu0  ;;  %v390_v44 = vpop.f32.mrf.mxu1 }
  0xdf   : > { %422 = vst.msk [vmem:[%s727_s9 + $0x18] sm:$0xff] %vm418_vm1, %v383_v41  ;;  %426 = vst.msk [vmem:[%s727_s9 + $0x38] sm:$0xff] %vm418_vm1, %v399_v42  ;;  %v375_v45 = vadd.f32 %v374_v43, %v233_v23  ;;  %v391_v46 = vadd.f32 %v390_v44, %v253_v26 }
  0xe0   : > { %v551_v48 = vpop.f32.mrf.mxu1 }
  0xe1   : > { %420 = vst.msk [vmem:[%s727_s9 + $0x8] sm:$0xff] %vm418_vm1, %v375_v45  ;;  %424 = vst.msk [vmem:[%s727_s9 + $0x28] sm:$0xff] %vm418_vm1, %v391_v46  ;;  %v412_v49 = vadd.f32 %v551_v48, %v278_v47 }
  0xe2   : > { %v403_v50 = vpop.f32.mrf.mxu1 }
  0xe3   : > { %429 = vst.msk [vmem:[%s727_s9 + $0x50] sm:$0xff] %vm418_vm1, %v412_v49  ;;  %v404_v51 = vadd.f32 %v403_v50, %v268_v31 }
  0xe4   : > { %v552_v53 = vpop.f32.mrf.mxu1 }
  0xe5   : > { %427 = vst.msk [vmem:[%s727_s9 + $0x40] sm:$0xff] %vm418_vm1, %v404_v51  ;;  %v415_v54 = vadd.f32 %v552_v53, %v283_v52 }
  0xe6   : > { %v406_v55 = vpop.f32.mrf.mxu1 }
  0xe7   : > { %430 = vst.msk [vmem:[%s727_s9 + $0x58] sm:$0xff] %vm418_vm1, %v415_v54  ;;  %v407_v56 = vadd.f32 %v406_v55, %v273_v40 }
  0xe9   : > { %428 = vst.msk [vmem:[%s727_s9 + $0x48] sm:$0xff] %vm418_vm1, %v407_v56 }
  0xea PF: > { %s13_s14 = sadd.s32 1, %s613_s14   ;;  %s766_s12 = smov %s609_s13 }
  0xeb   : > { %p10_p5 = scmp.ge.s32.totalorder %s13_s14, 4   ;;  %s767_s13 = smov %s769_s15 }
  0xed   :  { %12 = sbr.rel (!%p10_p5) target bundleno = 2 (0x2), region = 62 }

</bundles_post_ra>
